<compile_context>
chip_gen: v7x
topology: tpu7x:2x2x1
jax: 0.10.0
libtpu: 0.0.40
codegen_flags: <defaults>
</compile_context>

<pallas_src>
import functools

import jax
import jax.numpy as jnp
from jax.experimental import pallas as pl
from jax.experimental.pallas import tpu as pltpu


def _round_up(x, m):
    return ((x + m - 1) // m) * m


def _mlp_kernel(x_ref, *refs, num_layers):
    """refs = (w1, b1, w2, b2, ..., wL, bL, out_ref). Weights are (in, out)."""
    out_ref = refs[-1]
    wb = refs[:-1]

    h = x_ref[...].astype(jnp.float32)              # (TM, D_in)
    for i in range(num_layers):                      # static unroll
        w = wb[2 * i][...]                           # (D_in_i, D_out_i)
        b = wb[2 * i + 1][...]                       # (1, D_out_i)
        h = jnp.dot(h, w, preferred_element_type=jnp.float32) + b
        if i < num_layers - 1:
            h = jnp.maximum(h, 0.0)                  # ReLU on hidden layers
    out_ref[...] = h.astype(out_ref.dtype)


def mlp_forward(x, weights, biases, *, block_rows=256):
    """x: (..., input_dim). weights[i]: (in_i, out_i) == W_i^T. biases[i]: (out_i,)."""
    num_layers = len(weights)
    assert len(biases) == num_layers
    lead = x.shape[:-1]
    din = x.shape[-1]
    dout = weights[-1].shape[-1]

    # Flatten all leading dims into a single rows axis (contiguous, free).
    m = 1
    for d in lead:
        m *= d
    x2 = x.reshape(m, din)

    # Row tile: as many rows per grid step as reasonable (amortize grid
    # overhead, feed the MXU a tall LHS), multiple of 8 for sublane alignment.
    tm = min(block_rows, _round_up(m, 8))
    m_pad = _round_up(m, tm)
    if m_pad != m:
        x2 = jnp.pad(x2, ((0, m_pad - m), (0, 0)))

    in_specs = [pl.BlockSpec((tm, din), lambda i: (i, 0))]
    args = [x2]
    for w, b in zip(weights, biases):
        di, do = w.shape
        # Full-extent weight / bias blocks, resident across all grid steps.
        in_specs.append(pl.BlockSpec((di, do), lambda i: (0, 0)))
        in_specs.append(pl.BlockSpec((1, do), lambda i: (0, 0)))
        args.append(w)
        args.append(b.reshape(1, do))

    out = pl.pallas_call(
        functools.partial(_mlp_kernel, num_layers=num_layers),
        out_shape=jax.ShapeDtypeStruct((m_pad, dout), x.dtype),
        grid_spec=pltpu.PrefetchScalarGridSpec(
            num_scalar_prefetch=0,
            grid=(m_pad // tm,),
            in_specs=in_specs,
            out_specs=pl.BlockSpec((tm, dout), lambda i: (i, 0)),
        ),
        compiler_params=pltpu.CompilerParams(
            dimension_semantics=("parallel",)),
    )(*args)

    return out[:m].reshape(*lead, dout)


def _reference(x, weights, biases):
    h = x
    n = len(weights)
    for i, (w, b) in enumerate(zip(weights, biases)):
        h = h @ w + b
        if i < n - 1:
            h = jnp.maximum(h, 0.0)
    return h


if __name__ == "__main__":
    # Small shapes consistent with the module: batch=2, seq=8, dims 32/64/32.
    B, S = 2, 8
    INPUT_DIM, HIDDEN_DIM, OUTPUT_DIM, NUM_LAYERS = 32, 64, 32, 3

    key = jax.random.PRNGKey(0)
    k_x, *k_layers = jax.random.split(key, 1 + 2 * NUM_LAYERS)

    x = jax.random.normal(k_x, (B, S, INPUT_DIM), jnp.float32)

    # Layer dims: [input] + [hidden]*(L-1) -> [hidden]*(L-1) + [output]
    dims_in = [INPUT_DIM] + [HIDDEN_DIM] * (NUM_LAYERS - 1)
    dims_out = [HIDDEN_DIM] * (NUM_LAYERS - 1) + [OUTPUT_DIM]

    weights = []
    biases = []
    for li, (di, do) in enumerate(zip(dims_in, dims_out)):
        kw, kb = k_layers[2 * li], k_layers[2 * li + 1]
        # Deterministic init (scaled normal); stored as W^T = (in, out).
        w_t = jax.random.normal(kw, (di, do), jnp.float32) * (1.0 / (di ** 0.5))
        b = jax.random.normal(kb, (do,), jnp.float32) * 0.01
        weights.append(w_t)
        biases.append(b)

    out = mlp_forward(x, weights, biases)
    out = jax.block_until_ready(out)

    ref = _reference(x, weights, biases)
    assert out.shape == (B, S, OUTPUT_DIM), out.shape
    max_err = jnp.max(jnp.abs(out - ref))
    assert max_err < 1e-3, f"kernel does not match reference (max err {max_err})"

    print("KERNEL_OK")
</pallas_src>

<mosaic_0001>
module attributes {stable_mosaic.version = 11 : i64} {
  func.func @_mlp_kernel(%arg0: i32, %arg1: memref<16x32xf32, #tpu.memory_space<vmem>>, %arg2: memref<32x64xf32, #tpu.memory_space<vmem>>, %arg3: memref<1x64xf32, #tpu.memory_space<vmem>>, %arg4: memref<64x64xf32, #tpu.memory_space<vmem>>, %arg5: memref<1x64xf32, #tpu.memory_space<vmem>>, %arg6: memref<64x32xf32, #tpu.memory_space<vmem>>, %arg7: memref<1x32xf32, #tpu.memory_space<vmem>>, %arg8: memref<16x32xf32, #tpu.memory_space<vmem>>) attributes {dimension_semantics = [#tpu.dimension_semantics<parallel>], iteration_bounds = array<i64: 1>, scalar_prefetch = 0 : i64, scratch_operands = 0 : i64, tpu.core_type = #tpu.core_type<tc>, window_params = [{transform_indices = @transform_0, window_bounds = array<i64: 16, 32>}, {pipeline_mode = #tpu.pipeline_mode<synchronous>, transform_indices = @transform_1, window_bounds = array<i64: 32, 64>}, {pipeline_mode = #tpu.pipeline_mode<synchronous>, transform_indices = @transform_2, window_bounds = array<i64: 1, 64>}, {pipeline_mode = #tpu.pipeline_mode<synchronous>, transform_indices = @transform_3, window_bounds = array<i64: 64, 64>}, {pipeline_mode = #tpu.pipeline_mode<synchronous>, transform_indices = @transform_4, window_bounds = array<i64: 1, 64>}, {pipeline_mode = #tpu.pipeline_mode<synchronous>, transform_indices = @transform_5, window_bounds = array<i64: 64, 32>}, {pipeline_mode = #tpu.pipeline_mode<synchronous>, transform_indices = @transform_6, window_bounds = array<i64: 1, 32>}, {transform_indices = @transform_7, window_bounds = array<i64: 16, 32>}]} {
    %c0 = arith.constant 0 : index
    %c0_0 = arith.constant 0 : index
    %0 = vector.load %arg1[%c0, %c0_0] : memref<16x32xf32, #tpu.memory_space<vmem>>, vector<16x32xf32>
    %c0_1 = arith.constant 0 : index
    %c0_2 = arith.constant 0 : index
    %1 = vector.load %arg2[%c0_1, %c0_2] : memref<32x64xf32, #tpu.memory_space<vmem>>, vector<32x64xf32>
    %c0_3 = arith.constant 0 : index
    %c0_4 = arith.constant 0 : index
    %2 = vector.load %arg3[%c0_3, %c0_4] : memref<1x64xf32, #tpu.memory_space<vmem>>, vector<1x64xf32>
    %cst = arith.constant dense<0.000000e+00> : vector<16x64xf32>
    %3 = tpu.matmul %0, %1, %cst {dimension_numbers = #tpu.dot_dimension_numbers<[1], [0], [0], [1], [0, 0, 1, 1], [], []>} : vector<16x32xf32>, vector<32x64xf32>, vector<16x64xf32> -> vector<16x64xf32>
    %4 = vector.broadcast %2 : vector<1x64xf32> to vector<16x64xf32>
    %5 = arith.addf %3, %4 : vector<16x64xf32>
    %cst_5 = arith.constant 0.000000e+00 : f32
    %6 = vector.broadcast %cst_5 : f32 to vector<16x64xf32>
    %7 = arith.maximumf %5, %6 : vector<16x64xf32>
    %c0_6 = arith.constant 0 : index
    %c0_7 = arith.constant 0 : index
    %8 = vector.load %arg4[%c0_6, %c0_7] : memref<64x64xf32, #tpu.memory_space<vmem>>, vector<64x64xf32>
    %c0_8 = arith.constant 0 : index
    %c0_9 = arith.constant 0 : index
    %9 = vector.load %arg5[%c0_8, %c0_9] : memref<1x64xf32, #tpu.memory_space<vmem>>, vector<1x64xf32>
    %cst_10 = arith.constant dense<0.000000e+00> : vector<16x64xf32>
    %10 = tpu.matmul %7, %8, %cst_10 {dimension_numbers = #tpu.dot_dimension_numbers<[1], [0], [0], [1], [0, 0, 1, 1], [], []>} : vector<16x64xf32>, vector<64x64xf32>, vector<16x64xf32> -> vector<16x64xf32>
    %11 = vector.broadcast %9 : vector<1x64xf32> to vector<16x64xf32>
    %12 = arith.addf %10, %11 : vector<16x64xf32>
    %cst_11 = arith.constant 0.000000e+00 : f32
    %13 = vector.broadcast %cst_11 : f32 to vector<16x64xf32>
    %14 = arith.maximumf %12, %13 : vector<16x64xf32>
    %c0_12 = arith.constant 0 : index
    %c0_13 = arith.constant 0 : index
    %15 = vector.load %arg6[%c0_12, %c0_13] : memref<64x32xf32, #tpu.memory_space<vmem>>, vector<64x32xf32>
    %c0_14 = arith.constant 0 : index
    %c0_15 = arith.constant 0 : index
    %16 = vector.load %arg7[%c0_14, %c0_15] : memref<1x32xf32, #tpu.memory_space<vmem>>, vector<1x32xf32>
    %cst_16 = arith.constant dense<0.000000e+00> : vector<16x32xf32>
    %17 = tpu.matmul %14, %15, %cst_16 {dimension_numbers = #tpu.dot_dimension_numbers<[1], [0], [0], [1], [0, 0, 1, 1], [], []>} : vector<16x64xf32>, vector<64x32xf32>, vector<16x32xf32> -> vector<16x32xf32>
    %18 = vector.broadcast %16 : vector<1x32xf32> to vector<16x32xf32>
    %19 = arith.addf %17, %18 : vector<16x32xf32>
    %c0_17 = arith.constant 0 : index
    %c0_18 = arith.constant 0 : index
    %20 = vector.load %arg8[%c0_17, %c0_18] : memref<16x32xf32, #tpu.memory_space<vmem>>, vector<16x32xf32>
    tpu.vector_store %arg8[%c0_17, %c0_18], %19 {strides = array<i32>} : memref<16x32xf32, #tpu.memory_space<vmem>>, vector<16x32xf32>,
    return
  }
  func.func @transform_0(%arg0: i32) -> (i32, i32) {
    %c0_i32 = arith.constant 0 : i32
    %c0_i32_0 = arith.constant 0 : i32
    return %arg0, %c0_i32 : i32, i32
  }
  func.func @transform_1(%arg0: i32) -> (i32, i32) {
    %c0_i32 = arith.constant 0 : i32
    %c0_i32_0 = arith.constant 0 : i32
    %c0_i32_1 = arith.constant 0 : i32
    return %c0_i32, %c0_i32_0 : i32, i32
  }
  func.func @transform_2(%arg0: i32) -> (i32, i32) {
    %c0_i32 = arith.constant 0 : i32
    %c0_i32_0 = arith.constant 0 : i32
    %c0_i32_1 = arith.constant 0 : i32
    return %c0_i32, %c0_i32_0 : i32, i32
  }
  func.func @transform_3(%arg0: i32) -> (i32, i32) {
    %c0_i32 = arith.constant 0 : i32
    %c0_i32_0 = arith.constant 0 : i32
    %c0_i32_1 = arith.constant 0 : i32
    return %c0_i32, %c0_i32_0 : i32, i32
  }
  func.func @transform_4(%arg0: i32) -> (i32, i32) {
    %c0_i32 = arith.constant 0 : i32
    %c0_i32_0 = arith.constant 0 : i32
    %c0_i32_1 = arith.constant 0 : i32
    return %c0_i32, %c0_i32_0 : i32, i32
  }
  func.func @transform_5(%arg0: i32) -> (i32, i32) {
    %c0_i32 = arith.constant 0 : i32
    %c0_i32_0 = arith.constant 0 : i32
    %c0_i32_1 = arith.constant 0 : i32
    return %c0_i32, %c0_i32_0 : i32, i32
  }
  func.func @transform_6(%arg0: i32) -> (i32, i32) {
    %c0_i32 = arith.constant 0 : i32
    %c0_i32_0 = arith.constant 0 : i32
    %c0_i32_1 = arith.constant 0 : i32
    return %c0_i32, %c0_i32_0 : i32, i32
  }
  func.func @transform_7(%arg0: i32) -> (i32, i32) {
    %c0_i32 = arith.constant 0 : i32
    %c0_i32_0 = arith.constant 0 : i32
    return %arg0, %c0_i32 : i32, i32
  }
}

</mosaic_0001>

<bundles_post_ra>
// kernel: tpu_custom_call.1
= control target key start
LH: loop header
LB: loop body
LE: loop exit
PB: predicated region body
PF: predicated region fallthrough
CT: control target
= control target key end

     0   :  { %12 = vsyncpa [#allocation3], 0  ;;  %s679_s0 = inlined_call_operand.hbm [shape: f32[16,32], index: 0, kind: input, shape index: {}]   ;;  %s680_s1 = inlined_call_operand.vmem [shape: f32[32,64], index: 1, kind: input, shape index: {}]   ;;  %s681_s2 = inlined_call_operand.vmem [shape: f32[1,64], index: 2, kind: input, shape index: {}]   ;;  %s682_s3 = inlined_call_operand.vmem [shape: f32[64,64], index: 3, kind: input, shape index: {}]   ;;  %s683_s4 = inlined_call_operand.vmem [shape: f32[1,64], index: 4, kind: input, shape index: {}]   ;;  %s684_s5 = inlined_call_operand.vmem [shape: f32[64,32], index: 5, kind: input, shape index: {}]   ;;  %s685_s6 = inlined_call_operand.vmem [shape: f32[1,32], index: 6, kind: input, shape index: {}]   ;;  %s686_s7 = inlined_call_operand.hbm [shape: f32[16,32], index: 7, kind: output, shape index: {}]  }
   0x1   :  { %13 = vsyncpa [#allocation4], 0  ;;  %s528_s24 = smov [#allocation2]   ;;  %s480_s28 = scalar_lea.hbm %s679_s0, 256 }
   0x2   :  { %s19_s25 = sshll.u32 %s528_s24, 4  ;;  %p481_p0 = scmp.ne.s32.totalorder %s679_s0, %s480_s28  ;;  %s20_s25 = int_to_ptr.vmem [resolvable:$true] %s19_s25 }
   0x3   :  { %p484_p1 = scmp.lt.u32.totalorder %s480_s28, %s679_s0 }
   0x5   :  { %p486_p2 = pnand %p484_p1, %p481_p0 }
   0x7   :  { %489 = shalt.err (!%p486_p2)
}
   0x8   :  { %s490_s10 = scalar_lea.vmem %s20_s25, 256  ;;  %p495_p4 = scmp.lt.s32.totalorder %s20_s25, %s20_s25 }
   0x9   :  { %p491_p3 = scmp.ne.s32.totalorder %s20_s25, %s490_s10  ;;  %p496_p5 = scmp.lt.s32.totalorder %s490_s10, %s490_s10 }
   0xb   :  { %p497_p6 = por %p496_p5, %p495_p4 }
   0xd   :  { %p498_p7 = pnand %p497_p6, %p491_p3 }
   0xf   :  { %501 = shalt.err (!%p498_p7)
}
  0x10   :  { %s529_s11 = smov 128   ;;  %s530_s12 = smov 8  }
  0x11   :  { %25 = dma.hbm_to_vmem [thread:$0]  %s679_s0, 256, %s20_s25, [#allocation3], %s529_s11, %s529_s11, %s530_s12  }
  0x12   :  { %524 = dma.done.wait [#allocation3], 256  }
  0x13   :  { %525 = vsyncadd [#allocation3], 4294967040  ;;  %vm54_vm0 = vcmask 261120   ;;  %v43_v0 = vld [vmem:[%s680_s1] sm:$0xff]  ;;  %v44_v1 = vld [vmem:[%s680_s1 + $0x8] sm:$0xff]  ;;  %vm153_vm1 = vcmask 523264  }
  0x14   :  { %v45_v2 = vld [vmem:[%s680_s1 + $0x10] sm:$0xff]  ;;  %v436_v3 = vpack.c.bf16 %v44_v1, %v43_v0  ;;  %v46_v4 = vld [vmem:[%s680_s1 + $0x18] sm:$0xff]  ;;  %v41_v5 = vld [vmem:[#allocation2] sm:$0xff] }
  0x15   :  { %v440_v6 = vpack.c.bf16 %v46_v4, %v45_v2  ;;  %395 = vmatprep.mubr.msk.f32.mxu0 %vm54_vm0, %v41_v5  ;;  %v138_v7 = vld [vmem:[%s682_s3] sm:$0xff]  ;;  %v139_v8 = vld [vmem:[%s682_s3 + $0x8] sm:$0xff]  ;;  %v140_v9 = vld [vmem:[%s682_s3 + $0x10] sm:$0xff] }
  0x16   :  { %437 = vmatprep.subr.bf16.mxu0 %v436_v3  ;;  %v444_v10 = vpack.c.bf16 %v139_v8, %v138_v7  ;;  %v141_v11 = vld [vmem:[%s682_s3 + $0x18] sm:$0xff]  ;;  %v142_v13 = vld [vmem:[%s682_s3 + $0x20] sm:$0xff]  ;;  %v143_v14 = vld [vmem:[%s682_s3 + $0x28] sm:$0xff] }
  0x17   :  { %439 = vmatpush3.bf16.msra.mxu0 %v436_v3  ;;  %v448_v12 = vpack.c.bf16 %v141_v11, %v140_v9  ;;  %v452_v15 = vpack.c.bf16 %v143_v14, %v142_v13  ;;  %v42_v16 = vld [vmem:[#allocation2 + $0x8] sm:$0xff]  ;;  %v144_v17 = vld [vmem:[%s682_s3 + $0x30] sm:$0xff]  ;;  %v145_v18 = vld [vmem:[%s682_s3 + $0x38] sm:$0xff] }
  0x18   :  { %441 = vmatprep.subr.bf16.mxu0 %v440_v6  ;;  %445 = vmatprep.subr.bf16.mxu1 %v444_v10  ;;  %v456_v19 = vpack.c.bf16 %v145_v18, %v144_v17  ;;  %v237_v20 = vld [vmem:[%s684_s5] sm:$0xff]  ;;  %v238_v21 = vld [vmem:[%s684_s5 + $0x8] sm:$0xff]  ;;  %v239_v22 = vld [vmem:[%s684_s5 + $0x10] sm:$0xff] }
  0x19   :  { %447 = vmatpush3.bf16.msra.mxu1 %v444_v10  ;;  %v460_v23 = vpack.c.bf16 %v238_v21, %v237_v20  ;;  %v240_v24 = vld [vmem:[%s684_s5 + $0x18] sm:$0xff]  ;;  %v241_v26 = vld [vmem:[%s684_s5 + $0x20] sm:$0xff]  ;;  %v242_v27 = vld [vmem:[%s684_s5 + $0x28] sm:$0xff] }
  0x1a   :  { %449 = vmatprep.subr.bf16.mxu1 %v448_v12  ;;  %v464_v25 = vpack.c.bf16 %v240_v24, %v239_v22  ;;  %v468_v28 = vpack.c.bf16 %v242_v27, %v241_v26  ;;  %v352_v29 = vld [vmem:[%s681_s2] ss:$0 sm:$0xff]  ;;  %v243_v36 = vld [vmem:[%s684_s5 + $0x30] sm:$0xff]  ;;  %v244_v37 = vld [vmem:[%s684_s5 + $0x38] sm:$0xff]  ;;  %s531_s5 = smov [#allocation5]  }
  0x1b   :  { %443 = vmatpush3.bf16.msra.mxu0 %v440_v6  ;;  %v472_v38 = vpack.c.bf16 %v244_v37, %v243_v36  ;;  %v355_v39 = vld [vmem:[%s683_s4] ss:$0 sm:$0xff]  ;;  %s340_s13 = sshll.u32 %s531_s5, 4  ;;  %s341_s13 = int_to_ptr.vmem [resolvable:$true] %s340_s13 }
  0x1c   :  { %461 = vmatprep.subr.bf16.mxu0 %v460_v23  ;;  %v358_v46 = vld [vmem:[%s685_s6] ss:$0 sm:$0xff]  ;;  %s502_s4 = scalar_lea.vmem %s341_s13, 256  ;;  %p507_p9 = scmp.lt.s32.totalorder %s341_s13, %s341_s13 }
  0x1d   :  { %451 = vmatpush3.bf16.msra.mxu1 %v448_v12  ;;  %p503_p8 = scmp.ne.s32.totalorder %s341_s13, %s502_s4  ;;  %p508_p10 = scmp.lt.s32.totalorder %s502_s4, %s502_s4 }
  0x1e   :  { %396 = vmatmul.mubr.msk.f32.vlgmr.msra.gmra.mrb[0].mxu0 %vm54_vm0, %v42_v16  ;;  %453 = vmatprep.subr.bf16.mxu1 %v452_v15 }
  0x1f   :  { %463 = vmatpush3.bf16.msra.mxu0 %v460_v23  ;;  %p509_p11 = por %p508_p10, %p507_p9 }
  0x20   :  { %465 = vmatprep.subr.bf16.mxu0 %v464_v25 }
  0x21   :  { %455 = vmatpush3.bf16.msra.mxu1 %v452_v15  ;;  %p510_p12 = pnand %p509_p11, %p503_p8 }
  0x22   :  { %457 = vmatprep.subr.bf16.mxu1 %v456_v19 }
  0x23   :  { %467 = vmatpush3.bf16.msra.mxu0 %v464_v25 }
  0x24   :  { %469 = vmatprep.subr.bf16.mxu0 %v468_v28 }
  0x25   :  { %459 = vmatpush3.bf16.msra.mxu1 %v456_v19 }
  0x27   :  { %471 = vmatpush3.bf16.msra.mxu0 %v468_v28 }
  0x28   :  { %473 = vmatprep.subr.bf16.mxu0 %v472_v38 }
  0x2b   :  { %475 = vmatpush3.bf16.msra.mxu0 %v472_v38 }
  0xf1   :  { %v397_v30 = vpop.f32.mrb[0].mxu0 }
  0xf2   :  { %v133_v31 = vadd.f32 %v397_v30, %v352_v29  ;;  %v127_v32 = vpop.f32.mrb[1].mxu0 }
  0xf3   :  { %v128_v33 = vadd.f32 %v352_v29, %v127_v32 }
  0xf4   :  { %v137_v35 = vmax.f32 %v133_v31, 0.0 }
  0xf5   :  { %v136_v34 = vmax.f32 %v128_v33, 0.0 }
  0xf7   :  { %414 = vmatprep.mubr.msk.f32.mxu1 %vm153_vm1, %v136_v34 }
  0xf8   :  { %415 = vmatmul.mubr.msk.f32.vlgmr.msra.gmra.mrb[0].mxu1 %vm153_vm1, %v137_v35 }
 0x1cb   :  { %v416_v40 = vpop.f32.mrb[0].mxu1 }
 0x1cc   :  { %v232_v41 = vadd.f32 %v416_v40, %v355_v39  ;;  %v226_v42 = vpop.f32.mrb[1].mxu1 }
 0x1cd   :  { %v227_v43 = vadd.f32 %v355_v39, %v226_v42 }
 0x1ce   :  { %v236_v45 = vmax.f32 %v232_v41, 0.0 }
 0x1cf   :  { %v235_v44 = vmax.f32 %v227_v43, 0.0 }
 0x1d1   :  { %433 = vmatprep.mubr.msk.f32.mxu0 %vm153_vm1, %v235_v44 }
 0x1d2   :  { %434 = vmatmul.mubr.msk.f32.vlgmr.msra.gmra.mrb[2].mxu0 %vm153_vm1, %v236_v45 }
 0x2a5   :  { %v435_v47 = vpop.f32.mrb[2].mxu0 }
 0x2a6   :  { %v330_v48 = vadd.f32 %v435_v47, %v358_v46  ;;  %v324_v49 = vpop.f32.mrb[3].mxu0 }
 0x2a7   :  { %v325_v50 = vadd.f32 %v358_v46, %v324_v49 }
 0x2a8   :  { %334 = vst.msk [vmem:[#allocation5 + $0x8] sm:$0xff] %vm54_vm0, %v330_v48 }
 0x2a9   :  { %333 = vst.msk [vmem:[#allocation5] sm:$0xff] %vm54_vm0, %v325_v50 }
 0x2aa   :  { %513 = shalt.err (!%p510_p12)
}
 0x2ab   :  { %s514_s15 = scalar_lea.hbm %s686_s7, 256 }
 0x2ac   :  { %p515_p13 = scmp.ne.s32.totalorder %s686_s7, %s514_s15  ;;  %p518_p0 = scmp.lt.u32.totalorder %s514_s15, %s686_s7 }
 0x2ae   :  { %p520_p1 = pnand %p518_p0, %p515_p13 }
 0x2b0   :  { %523 = shalt.err (!%p520_p1)
}
 0x2b1   :  { %346 = dma.vmem_to_hbm [thread:$0]  %s341_s13, 256, %s686_s7, [#allocation4], %s529_s11, %s529_s11, %s530_s12  }
 0x2b2   :  { %526 = dma.done.wait [#allocation4], 256  }
 0x2b3   :  { %527 = vsyncadd [#allocation4], 4294967040 }
 0x2b4   :  { %350 = vsyncpa [#allocation3], 1 }
 0x2b5   :  { %351 = vsyncpa [#allocation4], 1 }

</bundles_post_ra>
